<compile_context>
chip_gen: v7x
topology: tpu7x:2x2x1
jax: 0.10.0
libtpu: 0.0.40
codegen_flags: <defaults>
</compile_context>

<pallas_src>
import math

import jax
import jax.numpy as jnp
from jax.experimental import pallas as pl
from jax.experimental.pallas import tpu as pltpu


def _round_up(x, m):
    return ((x + m - 1) // m) * m


# -----------------------------------------------------------------------------
# Kernel. Grid = (batch blocks ["parallel"], seq tiles ["arbitrary"]).
#   seq step 0 : fused LSTM cell + query projection (kept in VMEM scratch,
#                (A, batch) column layout).
#   every step : location conv (MXU) + tanh (EUP) + v-contraction (MXU) for the
#                tile; energies stored lane-dense into the resident output.
#   last step  : masked softmax over the full lane-dense (bt, seq_pad) slab.
# -----------------------------------------------------------------------------
def _lsa_kernel(
    xh_ref,      # (bt, in_dim + H)    [x | h0], matmul dtype
    wstk_ref,    # (in_dim + H, 4H)    [W_ih^T ; W_hh^T], matmul dtype
    b_ref,       # (1, 4H)             b_ih + b_hh, f32
    c0_ref,      # (bt, H)             f32
    taps_ref,    # (bt, KKp, seq_tile) shifted conv taps (zero-padded rows), f32
    wfold_ref,   # (A, KKp)            (conv ∘ location-linear fold)^T, f32
    wq_ref,      # (A, H)              query linear weight (torch layout)
    mem_ref,     # (bt, A, seq_tile)   memory_processed tile (seq in lanes)
    wv_ref,      # (1, A)              v linear, f32
    maskb_ref,   # (bt, seq_pad)       additive mask bias (0 / -1e30), resident
    attw_ref,    # out: (bt, seq_pad)  resident across the seq grid axis
    h_ref,       # out: (bt, H)
    c_ref,       # out: (bt, H)
    q_sc,        # scratch: (A, bt) f32  query projection, column layout
):
    j = pl.program_id(1)
    bt, H = h_ref.shape
    seq_tile = mem_ref.shape[2]

    # ---- once per batch block: fused LSTM cell (torch gate order i,f,g,o) ----
    @pl.when(j == 0)
    def _():
        gates = jnp.dot(xh_ref[...], wstk_ref[...],
                        preferred_element_type=jnp.float32) + b_ref[...]
        i_g = jax.nn.sigmoid(gates[:, 0 * H:1 * H])
        f_g = jax.nn.sigmoid(gates[:, 1 * H:2 * H])
        g_g = jnp.tanh(gates[:, 2 * H:3 * H])
        o_g = jax.nn.sigmoid(gates[:, 3 * H:4 * H])
        c_new = f_g * c0_ref[...] + i_g * g_g
        h_new = o_g * jnp.tanh(c_new)
        h_ref[...] = h_new
        c_ref[...] = c_new
        # Query projection directly in (A, batch) column layout: wq @ h_new^T.
        q_sc[...] = jnp.dot(wq_ref[...], h_new.astype(wq_ref.dtype).T,
                            preferred_element_type=jnp.float32)

    # ---- per seq tile: everything lane-dense, MXU for conv & v-contraction ----
    ts = pl.multiple_of(j * seq_tile, seq_tile)
    w_fold_t = wfold_ref[...]                         # (A, KKp)
    w_v = wv_ref[...]                                 # (1, A)
    rows = []
    for bb in range(bt):                              # tiny static batch loop
        loc = jnp.dot(w_fold_t, taps_ref[bb],
                      preferred_element_type=jnp.float32)          # (A, seq_tile)
        act = jnp.tanh(loc + q_sc[:, bb:bb + 1]
                       + mem_ref[bb].astype(jnp.float32))          # (A, seq_tile)
        rows.append(jnp.dot(w_v, act,
                            preferred_element_type=jnp.float32))   # (1, seq_tile)
    e_tile = rows[0] if bt == 1 else jnp.concatenate(rows, axis=0)
    attw_ref[:, pl.ds(ts, seq_tile)] = e_tile

    # ---- last seq tile: masked softmax over the full lane-dense seq slab ----
    @pl.when(j == pl.num_programs(1) - 1)
    def _():
        e_all = attw_ref[...] + maskb_ref[...]                     # (bt, seq_pad)
        m = jnp.max(e_all, axis=1, keepdims=True)
        p = jnp.exp(e_all - m)
        s = jnp.sum(p, axis=1, keepdims=True)
        inv = pl.reciprocal(s, approx=True)        # EUP
        inv = inv * (2.0 - s * inv)                # one Newton step (~1 ulp)
        attw_ref[...] = p * inv


def _vmem_budget(batch_tile, KKp, A, H, in_dim, seq_tile, seq_pad, mem_elsz):
    f32 = 4
    sub = lambda n: _round_up(max(n, 1), 8)
    lane = lambda n: _round_up(max(n, 1), 128)
    # streamed, double-buffered tiles
    stream = 2 * batch_tile * sub(KKp) * lane(seq_tile) * f32        # taps
    stream += 2 * batch_tile * sub(A) * lane(seq_tile) * mem_elsz    # memory
    # resident blocks (2 buffers each as a conservative bound)
    res = 2 * sub(batch_tile) * lane(seq_pad) * f32                  # attw out
    res += 2 * sub(batch_tile) * lane(seq_pad) * f32                 # mask bias
    res += 2 * (sub(batch_tile) * lane(in_dim + H)
                + sub(in_dim + H) * lane(4 * H)
                + sub(1) * lane(4 * H)
                + 3 * sub(batch_tile) * lane(H)
                + sub(A) * lane(KKp)
                + sub(A) * lane(H)
                + sub(1) * lane(A)) * f32
    scratch = sub(A) * lane(batch_tile) * f32
    total = stream + res + scratch
    return int(min(32 * 1024 * 1024, max(4 * 1024 * 1024, 2 * total)))


# -----------------------------------------------------------------------------
# Wrapper: weight folding, shifted-tap build, lane-dense layouts, pallas_call.
# -----------------------------------------------------------------------------
def location_sensitive_attention(params, attention_weights_cat, memory_processed,
                                 attention_lstm_input, attention_lstm_hidden, mask,
                                 *, seq_tile=512, batch_tile=None,
                                 matmul_dtype=jnp.float32):
    h0, c0 = attention_lstm_hidden
    bs, in_ch, seq = attention_weights_cat.shape            # in_ch == 2
    H = h0.shape[1]
    A = memory_processed.shape[2]
    loc_ch, _, K = params["w_conv"].shape
    pad = (K - 1) // 2
    in_dim = attention_lstm_input.shape[1]

    # Lane-dense seq padding & tiling: single tile for short sequences.
    seq128 = _round_up(seq, 128)
    seq_tile = max(128, _round_up(min(seq_tile, seq128), 128))
    seq_pad = _round_up(seq128, seq_tile)
    n_seq = seq_pad // seq_tile

    # Batch blocking: one block by default; 2-way split (v7x dual-TC) only when
    # it keeps sublane-aligned (multiple-of-8) batch blocks.
    if batch_tile is None:
        batch_tile = bs
        if bs >= 16 and bs % 2 == 0 and (bs // 2) % 8 == 0:
            batch_tile = bs // 2
    assert bs % batch_tile == 0
    n_batch = bs // batch_tile

    # Fused LSTM operands: one matmul [x | h0] @ [W_ih^T ; W_hh^T].
    xh = jnp.concatenate([attention_lstm_input, h0], axis=1).astype(matmul_dtype)
    w_stack = jnp.concatenate([params["w_ih"].T, params["w_hh"].T],
                              axis=0).astype(matmul_dtype)
    b = (params["b_ih"] + params["b_hh"])[None, :].astype(jnp.float32)

    # Fold the bias-free conv with the bias-free location linear, transposed so
    # the in-kernel conv is  w_fold_t(A,2K) @ taps(2K,seq_tile)  on the MXU.
    KK = in_ch * K
    KKp = _round_up(KK, 8)
    w_conv_rs = params["w_conv"].reshape(loc_ch, KK).astype(jnp.float32)   # (loc_ch, 2K)
    w_fold_t = params["w_loc"].astype(jnp.float32) @ w_conv_rs             # (A, 2K)
    w_fold_t = jnp.pad(w_fold_t, ((0, 0), (0, KKp - KK)))                  # (A, KKp)

    # Shifted-tap rows: taps[b, ch*K+k, s] = awc[b, ch, s + k - pad] (zero OOB),
    # so every per-tile tap access in the kernel is a lane-aligned block slice.
    awc = attention_weights_cat.astype(jnp.float32)                        # (bs, 2, seq)
    awc_z = jnp.pad(awc, ((0, 0), (0, 0),
                          (pad, (seq_pad - seq) + (K - 1 - pad))))
    taps = jnp.stack([awc_z[:, ch, k:k + seq_pad]
                      for ch in range(in_ch) for k in range(K)], axis=1)   # (bs, 2K, seq_pad)
    taps = jnp.pad(taps, ((0, 0), (0, KKp - KK), (0, 0)))                  # (bs, KKp, seq_pad)

    w_q = params["w_query"].astype(matmul_dtype)           # (A, H), torch layout
    w_v = params["w_v"].astype(jnp.float32)                # (1, A), lane-major

    # memory_processed streamed with seq in lanes; bf16 stream in bf16 setting.
    mem_t = jnp.transpose(memory_processed, (0, 2, 1)).astype(matmul_dtype)  # (bs, A, seq)
    mem_t = jnp.pad(mem_t, ((0, 0), (0, 0), (0, seq_pad - seq)))

    # Additive finite mask bias (0 keep / -1e30 drop); applied once at softmax.
    maskb = jnp.where(mask, 0.0, -1e30).astype(jnp.float32)
    maskb = jnp.pad(maskb, ((0, 0), (0, seq_pad - seq)), constant_values=-1e30)

    def _const(shape):
        nd = len(shape)
        return pl.BlockSpec(shape, lambda bi, j, _nd=nd: (0,) * _nd)

    in_specs = [
        pl.BlockSpec((batch_tile, in_dim + H), lambda bi, j: (bi, 0)),        # xh
        _const(w_stack.shape),                                                # LSTM weights
        _const(b.shape),                                                      # LSTM bias
        pl.BlockSpec((batch_tile, H), lambda bi, j: (bi, 0)),                 # c0
        pl.BlockSpec((batch_tile, KKp, seq_tile), lambda bi, j: (bi, 0, j)),  # taps tile
        _const(w_fold_t.shape),                                               # folded conv w^T
        _const(w_q.shape),                                                    # query weight
        pl.BlockSpec((batch_tile, A, seq_tile), lambda bi, j: (bi, 0, j)),    # memory tile
        _const(w_v.shape),                                                    # v weight
        pl.BlockSpec((batch_tile, seq_pad), lambda bi, j: (bi, 0)),           # mask bias
    ]
    out_specs = (
        pl.BlockSpec((batch_tile, seq_pad), lambda bi, j: (bi, 0)),           # attw (resident)
        pl.BlockSpec((batch_tile, H), lambda bi, j: (bi, 0)),                 # h
        pl.BlockSpec((batch_tile, H), lambda bi, j: (bi, 0)),                 # c
    )
    out_shape = (
        jax.ShapeDtypeStruct((bs, seq_pad), jnp.float32),
        jax.ShapeDtypeStruct((bs, H), jnp.float32),
        jax.ShapeDtypeStruct((bs, H), jnp.float32),
    )

    vmem_limit = _vmem_budget(batch_tile, KKp, A, H, in_dim, seq_tile, seq_pad,
                              jnp.dtype(matmul_dtype).itemsize)

    fn = pl.pallas_call(
        _lsa_kernel,
        grid=(n_batch, n_seq),
        in_specs=in_specs,
        out_specs=out_specs,
        out_shape=out_shape,
        scratch_shapes=[pltpu.VMEM((A, batch_tile), jnp.float32)],
        compiler_params=pltpu.CompilerParams(
            dimension_semantics=("parallel", "arbitrary"),
            vmem_limit_bytes=vmem_limit,
        ),
    )
    attw_full, h_new, c_new = fn(
        xh, w_stack, b, c0.astype(jnp.float32), taps,
        w_fold_t, w_q, mem_t, w_v, maskb,
    )
    return attw_full[:, :seq], (h_new, c_new)


# -----------------------------------------------------------------------------
# Deterministic parameter init (matches the torch module's shapes / init style)
# -----------------------------------------------------------------------------
def init_params(key, lstm_in, lstm_dim, att_hid, K, loc_ch):
    ks = jax.random.split(key, 8)

    def uniform(k, shape, lim):
        return jax.random.uniform(k, shape, jnp.float32, -lim, lim)

    def xavier(k, shape, fan_in, fan_out, gain):
        lim = gain * math.sqrt(6.0 / (fan_in + fan_out))
        return uniform(k, shape, lim)

    klstm = 1.0 / math.sqrt(lstm_dim)
    gain_tanh = 5.0 / 3.0
    return {
        # nn.LSTMCell(lstm_in, lstm_dim)
        "w_ih": uniform(ks[0], (4 * lstm_dim, lstm_in), klstm),
        "w_hh": uniform(ks[1], (4 * lstm_dim, lstm_dim), klstm),
        "b_ih": uniform(ks[2], (4 * lstm_dim,), klstm),
        "b_hh": uniform(ks[3], (4 * lstm_dim,), klstm),
        # Conv1dXavier(2, loc_ch, K, bias=False, gain='tanh')
        "w_conv": xavier(ks[4], (loc_ch, 2, K), 2 * K, loc_ch * K, gain_tanh),
        # LinearXavier(loc_ch, att_hid, bias=False, gain='tanh')
        "w_loc": xavier(ks[5], (att_hid, loc_ch), loc_ch, att_hid, gain_tanh),
        # LinearXavier(lstm_dim, att_hid, bias=False, gain='tanh')
        "w_query": xavier(ks[6], (att_hid, lstm_dim), lstm_dim, att_hid, gain_tanh),
        # LinearXavier(att_hid, 1, bias=False, gain='linear')
        "w_v": xavier(ks[7], (1, att_hid), att_hid, 1, 1.0),
    }


# -----------------------------------------------------------------------------
# Pure-JAX reference (for a silent correctness check)
# -----------------------------------------------------------------------------
def ref_forward(params, awc, mem, x, hidden, mask):
    h0, c0 = hidden
    H = h0.shape[1]
    gates = x @ params["w_ih"].T + params["b_ih"] + h0 @ params["w_hh"].T + params["b_hh"]
    i = jax.nn.sigmoid(gates[:, :H])
    f = jax.nn.sigmoid(gates[:, H:2 * H])
    g = jnp.tanh(gates[:, 2 * H:3 * H])
    o = jax.nn.sigmoid(gates[:, 3 * H:])
    c_new = f * c0 + i * g
    h_new = o * jnp.tanh(c_new)

    K = params["w_conv"].shape[-1]
    pad = (K - 1) // 2
    loc = jax.lax.conv_general_dilated(
        awc, params["w_conv"], (1,), [(pad, pad)],
        dimension_numbers=("NCH", "OIH", "NCH"))
    loc = jnp.transpose(loc, (0, 2, 1)) @ params["w_loc"].T
    q = h_new @ params["w_query"].T
    e = (jnp.tanh(loc + q[:, None, :] + mem) @ params["w_v"].T)[..., 0]
    e = jnp.where(mask, e, -jnp.inf)
    return jax.nn.softmax(e, axis=1), (h_new, c_new)


if __name__ == "__main__":
    bs, seq = 2, 200
    lstm_in, lstm_dim, att_hid = 32, 32, 32
    K, loc_ch = 5, 8

    key = jax.random.PRNGKey(0)
    kp, k1, k2, k3, k4, k5 = jax.random.split(key, 6)
    params = init_params(kp, lstm_in, lstm_dim, att_hid, K, loc_ch)

    attention_weights_cat = jax.random.uniform(k1, (bs, 2, seq), jnp.float32)
    memory_processed = jax.random.normal(k2, (bs, seq, att_hid), jnp.float32)
    attention_lstm_input = jax.random.normal(k3, (bs, lstm_in), jnp.float32)
    h0 = jax.random.normal(k4, (bs, lstm_dim), jnp.float32) * 0.1
    c0 = jax.random.normal(k5, (bs, lstm_dim), jnp.float32) * 0.1
    lengths = jnp.array([seq, seq - 37])
    mask = jnp.arange(seq)[None, :] < lengths[:, None]        # (bs, seq) bool

    r_attw, (r_h, r_c) = ref_forward(
        params, attention_weights_cat, memory_processed,
        attention_lstm_input, (h0, c0), mask)

    # f32 path, single seq tile (seq_pad = 256, grid seq-extent 1).
    attw, (h_new, c_new) = location_sensitive_attention(
        params, attention_weights_cat, memory_processed,
        attention_lstm_input, (h0, c0), mask)
    jax.block_until_ready((attw, h_new, c_new))
    assert jnp.allclose(attw, r_attw, atol=1e-5, rtol=1e-5)
    assert jnp.allclose(h_new, r_h, atol=1e-5, rtol=1e-5)
    assert jnp.allclose(c_new, r_c, atol=1e-5, rtol=1e-5)

    # f32 path, forced multi-tile (seq_tile=128 -> 2 seq tiles): exercises the
    # resident-energy accumulation + last-step softmax path.
    attw_t, (h_t, c_t) = location_sensitive_attention(
        params, attention_weights_cat, memory_processed,
        attention_lstm_input, (h0, c0), mask, seq_tile=128)
    jax.block_until_ready((attw_t, h_t, c_t))
    assert jnp.allclose(attw_t, r_attw, atol=1e-5, rtol=1e-5)
    assert jnp.allclose(h_t, r_h, atol=1e-5, rtol=1e-5)

    # bf16 MXU-operand / bf16 memory-stream variant (production) — smoke check.
    attw_b, (h_b, c_b) = location_sensitive_attention(
        params, attention_weights_cat, memory_processed,
        attention_lstm_input, (h0, c0), mask, matmul_dtype=jnp.bfloat16)
    jax.block_until_ready((attw_b, h_b, c_b))
    assert jnp.allclose(attw_b, r_attw, atol=5e-2)
    assert jnp.allclose(h_b, r_h, atol=5e-2)

    print("KERNEL_OK")
</pallas_src>

<mosaic_0001>
module attributes {stable_mosaic.version = 11 : i64} {
  func.func @_lsa_kernel(%arg0: i32, %arg1: i32, %arg2: memref<2x64xf32, #tpu.memory_space<vmem>>, %arg3: memref<64x128xf32, #tpu.memory_space<vmem>>, %arg4: memref<1x128xf32, #tpu.memory_space<vmem>>, %arg5: memref<2x32xf32, #tpu.memory_space<vmem>>, %arg6: memref<2x16x256xf32, #tpu.memory_space<vmem>>, %arg7: memref<32x16xf32, #tpu.memory_space<vmem>>, %arg8: memref<32x32xf32, #tpu.memory_space<vmem>>, %arg9: memref<2x32x256xf32, #tpu.memory_space<vmem>>, %arg10: memref<1x32xf32, #tpu.memory_space<vmem>>, %arg11: memref<2x256xf32, #tpu.memory_space<vmem>>, %arg12: memref<2x256xf32, #tpu.memory_space<vmem>>, %arg13: memref<2x32xf32, #tpu.memory_space<vmem>>, %arg14: memref<2x32xf32, #tpu.memory_space<vmem>>, %arg15: memref<32x2xf32, #tpu.memory_space<vmem>>) attributes {dimension_semantics = [#tpu.dimension_semantics<parallel>, #tpu.dimension_semantics<arbitrary>], iteration_bounds = array<i64: 1, 1>, scalar_prefetch = 0 : i64, scratch_operands = 1 : i64, tpu.core_type = #tpu.core_type<tc>, window_params = [{transform_indices = @transform_0, window_bounds = array<i64: 2, 64>}, {pipeline_mode = #tpu.pipeline_mode<synchronous>, transform_indices = @transform_1, window_bounds = array<i64: 64, 128>}, {pipeline_mode = #tpu.pipeline_mode<synchronous>, transform_indices = @transform_2, window_bounds = array<i64: 1, 128>}, {transform_indices = @transform_3, window_bounds = array<i64: 2, 32>}, {transform_indices = @transform_4, window_bounds = array<i64: 2, 16, 256>}, {pipeline_mode = #tpu.pipeline_mode<synchronous>, transform_indices = @transform_5, window_bounds = array<i64: 32, 16>}, {pipeline_mode = #tpu.pipeline_mode<synchronous>, transform_indices = @transform_6, window_bounds = array<i64: 32, 32>}, {transform_indices = @transform_7, window_bounds = array<i64: 2, 32, 256>}, {pipeline_mode = #tpu.pipeline_mode<synchronous>, transform_indices = @transform_8, window_bounds = array<i64: 1, 32>}, {transform_indices = @transform_9, window_bounds = array<i64: 2, 256>}, {transform_indices = @transform_10, window_bounds = array<i64: 2, 256>}, {transform_indices = @transform_11, window_bounds = array<i64: 2, 32>}, {transform_indices = @transform_12, window_bounds = array<i64: 2, 32>}]} {
    %c0_i32 = arith.constant 0 : i32
    %0 = arith.cmpi eq, %arg1, %c0_i32 : i32
    %1 = arith.extui %0 : i1 to i32
    %c0_i32_0 = arith.constant 0 : i32
    %2 = arith.cmpi ne, %1, %c0_i32_0 : i32
    scf.if %2 {
      %c0_25 = arith.constant 0 : index
      %c0_26 = arith.constant 0 : index
      %35 = vector.load %arg2[%c0_25, %c0_26] : memref<2x64xf32, #tpu.memory_space<vmem>>, vector<2x64xf32>
      %c0_27 = arith.constant 0 : index
      %c0_28 = arith.constant 0 : index
      %36 = vector.load %arg3[%c0_27, %c0_28] : memref<64x128xf32, #tpu.memory_space<vmem>>, vector<64x128xf32>
      %cst_29 = arith.constant dense<0.000000e+00> : vector<2x128xf32>
      %37 = tpu.matmul %35, %36, %cst_29 {dimension_numbers = #tpu.dot_dimension_numbers<[1], [0], [0], [1], [0, 0, 1, 1], [], []>} : vector<2x64xf32>, vector<64x128xf32>, vector<2x128xf32> -> vector<2x128xf32>
      %c0_30 = arith.constant 0 : index
      %c0_31 = arith.constant 0 : index
      %38 = vector.load %arg4[%c0_30, %c0_31] : memref<1x128xf32, #tpu.memory_space<vmem>>, vector<1x128xf32>
      %39 = vector.broadcast %38 : vector<1x128xf32> to vector<2x128xf32>
      %40 = arith.addf %37, %39 : vector<2x128xf32>
      %41 = vector.extract_strided_slice %40 {offsets = [0, 0], sizes = [2, 32], strides = [1, 1]} : vector<2x128xf32> to vector<2x32xf32>
      %42 = arith.negf %41 : vector<2x32xf32>
      %43 = math.exp %42 : vector<2x32xf32>
      %cst_32 = arith.constant 1.000000e+00 : f32
      %44 = vector.broadcast %cst_32 : f32 to vector<2x32xf32>
      %45 = arith.addf %44, %43 : vector<2x32xf32>
      %46 = arith.divf %44, %45 : vector<2x32xf32>
      %47 = vector.extract_strided_slice %40 {offsets = [0, 32], sizes = [2, 32], strides = [1, 1]} : vector<2x128xf32> to vector<2x32xf32>
      %48 = arith.negf %47 : vector<2x32xf32>
      %49 = math.exp %48 : vector<2x32xf32>
      %cst_33 = arith.constant 1.000000e+00 : f32
      %50 = vector.broadcast %cst_33 : f32 to vector<2x32xf32>
      %51 = arith.addf %50, %49 : vector<2x32xf32>
      %52 = arith.divf %50, %51 : vector<2x32xf32>
      %53 = vector.extract_strided_slice %40 {offsets = [0, 64], sizes = [2, 32], strides = [1, 1]} : vector<2x128xf32> to vector<2x32xf32>
      %54 = math.tanh %53 : vector<2x32xf32>
      %55 = vector.extract_strided_slice %40 {offsets = [0, 96], sizes = [2, 32], strides = [1, 1]} : vector<2x128xf32> to vector<2x32xf32>
      %56 = arith.negf %55 : vector<2x32xf32>
      %57 = math.exp %56 : vector<2x32xf32>
      %cst_34 = arith.constant 1.000000e+00 : f32
      %58 = vector.broadcast %cst_34 : f32 to vector<2x32xf32>
      %59 = arith.addf %58, %57 : vector<2x32xf32>
      %60 = arith.divf %58, %59 : vector<2x32xf32>
      %c0_35 = arith.constant 0 : index
      %c0_36 = arith.constant 0 : index
      %61 = vector.load %arg5[%c0_35, %c0_36] : memref<2x32xf32, #tpu.memory_space<vmem>>, vector<2x32xf32>
      %62 = arith.mulf %52, %61 : vector<2x32xf32>
      %63 = arith.mulf %46, %54 : vector<2x32xf32>
      %64 = arith.addf %62, %63 : vector<2x32xf32>
      %65 = math.tanh %64 : vector<2x32xf32>
      %66 = arith.mulf %60, %65 : vector<2x32xf32>
      %c0_37 = arith.constant 0 : index
      %c0_38 = arith.constant 0 : index
      %67 = vector.load %arg13[%c0_37, %c0_38] : memref<2x32xf32, #tpu.memory_space<vmem>>, vector<2x32xf32>
      tpu.vector_store %arg13[%c0_37, %c0_38], %66 {strides = array<i32>} : memref<2x32xf32, #tpu.memory_space<vmem>>, vector<2x32xf32>,
      %c0_39 = arith.constant 0 : index
      %c0_40 = arith.constant 0 : index
      %68 = vector.load %arg14[%c0_39, %c0_40] : memref<2x32xf32, #tpu.memory_space<vmem>>, vector<2x32xf32>
      tpu.vector_store %arg14[%c0_39, %c0_40], %64 {strides = array<i32>} : memref<2x32xf32, #tpu.memory_space<vmem>>, vector<2x32xf32>,
      %c0_41 = arith.constant 0 : index
      %c0_42 = arith.constant 0 : index
      %69 = vector.load %arg8[%c0_41, %c0_42] : memref<32x32xf32, #tpu.memory_space<vmem>>, vector<32x32xf32>
      %70 = tpu.transpose %66, [1, 0] : vector<2x32xf32> -> vector<32x2xf32>
      %cst_43 = arith.constant dense<0.000000e+00> : vector<32x2xf32>
      %71 = tpu.matmul %69, %70, %cst_43 {dimension_numbers = #tpu.dot_dimension_numbers<[1], [0], [0], [1], [0, 0, 1, 1], [], []>} : vector<32x32xf32>, vector<32x2xf32>, vector<32x2xf32> -> vector<32x2xf32>
      %c0_44 = arith.constant 0 : index
      %c0_45 = arith.constant 0 : index
      %72 = vector.load %arg15[%c0_44, %c0_45] : memref<32x2xf32, #tpu.memory_space<vmem>>, vector<32x2xf32>
      tpu.vector_store %arg15[%c0_44, %c0_45], %71 {strides = array<i32>} : memref<32x2xf32, #tpu.memory_space<vmem>>, vector<32x2xf32>,
    } else {
    }
    %c256_i32 = arith.constant 256 : i32
    %3 = arith.muli %arg1, %c256_i32 : i32
    %4 = tpu.assume_multiple %3, 256 : i32
    %c0 = arith.constant 0 : index
    %c0_1 = arith.constant 0 : index
    %5 = vector.load %arg7[%c0, %c0_1] : memref<32x16xf32, #tpu.memory_space<vmem>>, vector<32x16xf32>
    %c0_2 = arith.constant 0 : index
    %c0_3 = arith.constant 0 : index
    %6 = vector.load %arg10[%c0_2, %c0_3] : memref<1x32xf32, #tpu.memory_space<vmem>>, vector<1x32xf32>
    %c0_4 = arith.constant 0 : index
    %c0_5 = arith.constant 0 : index
    %c0_6 = arith.constant 0 : index
    %7 = vector.load %arg6[%c0_4, %c0_5, %c0_6] : memref<2x16x256xf32, #tpu.memory_space<vmem>>, vector<1x16x256xf32>
    %8 = vector.shape_cast %7 : vector<1x16x256xf32> to vector<16x256xf32>
    %cst = arith.constant dense<0.000000e+00> : vector<32x256xf32>
    %9 = tpu.matmul %5, %8, %cst {dimension_numbers = #tpu.dot_dimension_numbers<[1], [0], [0], [1], [0, 0, 1, 1], [], []>} : vector<32x16xf32>, vector<16x256xf32>, vector<32x256xf32> -> vector<32x256xf32>
    %c0_7 = arith.constant 0 : index
    %c0_8 = arith.constant 0 : index
    %10 = vector.load %arg15[%c0_7, %c0_8] : memref<32x2xf32, #tpu.memory_space<vmem>>, vector<32x1xf32>
    %11 = vector.broadcast %10 : vector<32x1xf32> to vector<32x256xf32>
    %12 = arith.addf %9, %11 : vector<32x256xf32>
    %c0_9 = arith.constant 0 : index
    %c0_10 = arith.constant 0 : index
    %c0_11 = arith.constant 0 : index
    %13 = vector.load %arg9[%c0_9, %c0_10, %c0_11] : memref<2x32x256xf32, #tpu.memory_space<vmem>>, vector<1x32x256xf32>
    %14 = vector.shape_cast %13 : vector<1x32x256xf32> to vector<32x256xf32>
    %15 = arith.addf %12, %14 : vector<32x256xf32>
    %16 = math.tanh %15 : vector<32x256xf32>
    %cst_12 = arith.constant dense<0.000000e+00> : vector<1x256xf32>
    %17 = tpu.matmul %6, %16, %cst_12 {dimension_numbers = #tpu.dot_dimension_numbers<[1], [0], [0], [1], [0, 0, 1, 1], [], []>} : vector<1x32xf32>, vector<32x256xf32>, vector<1x256xf32> -> vector<1x256xf32>
    %c1 = arith.constant 1 : index
    %c0_13 = arith.constant 0 : index
    %c0_14 = arith.constant 0 : index
    %18 = vector.load %arg6[%c1, %c0_13, %c0_14] : memref<2x16x256xf32, #tpu.memory_space<vmem>>, vector<1x16x256xf32>
    %19 = vector.shape_cast %18 : vector<1x16x256xf32> to vector<16x256xf32>
    %cst_15 = arith.constant dense<0.000000e+00> : vector<32x256xf32>
    %20 = tpu.matmul %5, %19, %cst_15 {dimension_numbers = #tpu.dot_dimension_numbers<[1], [0], [0], [1], [0, 0, 1, 1], [], []>} : vector<32x16xf32>, vector<16x256xf32>, vector<32x256xf32> -> vector<32x256xf32>
    %c0_16 = arith.constant 0 : index
    %c1_17 = arith.constant 1 : index
    %21 = vector.load %arg15[%c0_16, %c1_17] : memref<32x2xf32, #tpu.memory_space<vmem>>, vector<32x1xf32>
    %22 = vector.broadcast %21 : vector<32x1xf32> to vector<32x256xf32>
    %23 = arith.addf %20, %22 : vector<32x256xf32>
    %c1_18 = arith.constant 1 : index
    %c0_19 = arith.constant 0 : index
    %c0_20 = arith.constant 0 : index
    %24 = vector.load %arg9[%c1_18, %c0_19, %c0_20] : memref<2x32x256xf32, #tpu.memory_space<vmem>>, vector<1x32x256xf32>
    %25 = vector.shape_cast %24 : vector<1x32x256xf32> to vector<32x256xf32>
    %26 = arith.addf %23, %25 : vector<32x256xf32>
    %27 = math.tanh %26 : vector<32x256xf32>
    %cst_21 = arith.constant dense<0.000000e+00> : vector<1x256xf32>
    %28 = tpu.matmul %6, %27, %cst_21 {dimension_numbers = #tpu.dot_dimension_numbers<[1], [0], [0], [1], [0, 0, 1, 1], [], []>} : vector<1x32xf32>, vector<32x256xf32>, vector<1x256xf32> -> vector<1x256xf32>
    %29 = tpu.concatenate %17, %28 in 0 : vector<1x256xf32>, vector<1x256xf32> -> vector<2x256xf32>
    %c0_22 = arith.constant 0 : index
    %30 = arith.index_cast %4 : i32 to index
    %31 = vector.load %arg12[%c0_22, %30] : memref<2x256xf32, #tpu.memory_space<vmem>>, vector<2x256xf32>
    tpu.vector_store %arg12[%c0_22, %30], %29 {strides = array<i32>} : memref<2x256xf32, #tpu.memory_space<vmem>>, vector<2x256xf32>,
    %c0_i32_23 = arith.constant 0 : i32
    %32 = arith.cmpi eq, %arg1, %c0_i32_23 : i32
    %33 = arith.extui %32 : i1 to i32
    %c0_i32_24 = arith.constant 0 : i32
    %34 = arith.cmpi ne, %33, %c0_i32_24 : i32
    scf.if %34 {
      %c0_25 = arith.constant 0 : index
      %c0_26 = arith.constant 0 : index
      %35 = vector.load %arg12[%c0_25, %c0_26] : memref<2x256xf32, #tpu.memory_space<vmem>>, vector<2x256xf32>
      %c0_27 = arith.constant 0 : index
      %c0_28 = arith.constant 0 : index
      %36 = vector.load %arg11[%c0_27, %c0_28] : memref<2x256xf32, #tpu.memory_space<vmem>>, vector<2x256xf32>
      %37 = arith.addf %35, %36 : vector<2x256xf32>
      %cst_29 = arith.constant dense<0xFF800000> : vector<2xf32>
      %38 = vector.multi_reduction <maximumf>, %37, %cst_29 [1] : vector<2x256xf32> to vector<2xf32>
      %39 = vector.shape_cast %38 : vector<2xf32> to vector<2x1xf32>
      %40 = vector.broadcast %39 : vector<2x1xf32> to vector<2x256xf32>
      %41 = arith.subf %37, %40 : vector<2x256xf32>
      %42 = math.exp %41 : vector<2x256xf32>
      %cst_30 = arith.constant dense<0.000000e+00> : vector<2xf32>
      %43 = vector.multi_reduction <add>, %42, %cst_30 [1] : vector<2x256xf32> to vector<2xf32>
      %44 = vector.shape_cast %43 : vector<2xf32> to vector<2x1xf32>
      %45 = tpu.reciprocal %44 {approx = true} : vector<2x1xf32> -> vector<2x1xf32>
      %46 = arith.mulf %44, %45 : vector<2x1xf32>
      %cst_31 = arith.constant 2.000000e+00 : f32
      %47 = vector.broadcast %cst_31 : f32 to vector<2x1xf32>
      %48 = arith.subf %47, %46 : vector<2x1xf32>
      %49 = arith.mulf %45, %48 : vector<2x1xf32>
      %50 = vector.broadcast %49 : vector<2x1xf32> to vector<2x256xf32>
      %51 = arith.mulf %42, %50 : vector<2x256xf32>
      %c0_32 = arith.constant 0 : index
      %c0_33 = arith.constant 0 : index
      %52 = vector.load %arg12[%c0_32, %c0_33] : memref<2x256xf32, #tpu.memory_space<vmem>>, vector<2x256xf32>
      tpu.vector_store %arg12[%c0_32, %c0_33], %51 {strides = array<i32>} : memref<2x256xf32, #tpu.memory_space<vmem>>, vector<2x256xf32>,
    } else {
    }
    return
  }
  func.func @transform_0(%arg0: i32, %arg1: i32) -> (i32, i32) {
    %c0_i32 = arith.constant 0 : i32
    %c0_i32_0 = arith.constant 0 : i32
    return %arg0, %c0_i32 : i32, i32
  }
  func.func @transform_1(%arg0: i32, %arg1: i32) -> (i32, i32) {
    %c0_i32 = arith.constant 0 : i32
    %c0_i32_0 = arith.constant 0 : i32
    %c0_i32_1 = arith.constant 0 : i32
    return %c0_i32, %c0_i32_0 : i32, i32
  }
  func.func @transform_2(%arg0: i32, %arg1: i32) -> (i32, i32) {
    %c0_i32 = arith.constant 0 : i32
    %c0_i32_0 = arith.constant 0 : i32
    %c0_i32_1 = arith.constant 0 : i32
    return %c0_i32, %c0_i32_0 : i32, i32
  }
  func.func @transform_3(%arg0: i32, %arg1: i32) -> (i32, i32) {
    %c0_i32 = arith.constant 0 : i32
    %c0_i32_0 = arith.constant 0 : i32
    return %arg0, %c0_i32 : i32, i32
  }
  func.func @transform_4(%arg0: i32, %arg1: i32) -> (i32, i32, i32) {
    %c0_i32 = arith.constant 0 : i32
    %c0_i32_0 = arith.constant 0 : i32
    return %arg0, %c0_i32, %arg1 : i32, i32, i32
  }
  func.func @transform_5(%arg0: i32, %arg1: i32) -> (i32, i32) {
    %c0_i32 = arith.constant 0 : i32
    %c0_i32_0 = arith.constant 0 : i32
    %c0_i32_1 = arith.constant 0 : i32
    return %c0_i32, %c0_i32_0 : i32, i32
  }
  func.func @transform_6(%arg0: i32, %arg1: i32) -> (i32, i32) {
    %c0_i32 = arith.constant 0 : i32
    %c0_i32_0 = arith.constant 0 : i32
    %c0_i32_1 = arith.constant 0 : i32
    return %c0_i32, %c0_i32_0 : i32, i32
  }
  func.func @transform_7(%arg0: i32, %arg1: i32) -> (i32, i32, i32) {
    %c0_i32 = arith.constant 0 : i32
    %c0_i32_0 = arith.constant 0 : i32
    return %arg0, %c0_i32, %arg1 : i32, i32, i32
  }
  func.func @transform_8(%arg0: i32, %arg1: i32) -> (i32, i32) {
    %c0_i32 = arith.constant 0 : i32
    %c0_i32_0 = arith.constant 0 : i32
    %c0_i32_1 = arith.constant 0 : i32
    return %c0_i32, %c0_i32_0 : i32, i32
  }
  func.func @transform_9(%arg0: i32, %arg1: i32) -> (i32, i32) {
    %c0_i32 = arith.constant 0 : i32
    %c0_i32_0 = arith.constant 0 : i32
    return %arg0, %c0_i32 : i32, i32
  }
  func.func @transform_10(%arg0: i32, %arg1: i32) -> (i32, i32) {
    %c0_i32 = arith.constant 0 : i32
    %c0_i32_0 = arith.constant 0 : i32
    return %arg0, %c0_i32 : i32, i32
  }
  func.func @transform_11(%arg0: i32, %arg1: i32) -> (i32, i32) {
    %c0_i32 = arith.constant 0 : i32
    %c0_i32_0 = arith.constant 0 : i32
    return %arg0, %c0_i32 : i32, i32
  }
  func.func @transform_12(%arg0: i32, %arg1: i32) -> (i32, i32) {
    %c0_i32 = arith.constant 0 : i32
    %c0_i32_0 = arith.constant 0 : i32
    return %arg0, %c0_i32 : i32, i32
  }
}

</mosaic_0001>

<bundles_post_ra>
// kernel: tpu_custom_call.1
= control target key start
LH: loop header
LB: loop body
LE: loop exit
PB: predicated region body
PF: predicated region fallthrough
CT: control target
= control target key end

     0   :  { %18 = vsyncpa [#allocation4], 0  ;;  %s1456_s0 = inlined_call_operand.vmem [shape: f32[2,64], index: 0, kind: input, shape index: {}]   ;;  %s1457_s1 = inlined_call_operand.hbm [shape: f32[64,128], index: 1, kind: input, shape index: {}]   ;;  %s1458_s2 = inlined_call_operand.vmem [shape: f32[1,128], index: 2, kind: input, shape index: {}]   ;;  %s1459_s3 = inlined_call_operand.vmem [shape: f32[2,32], index: 3, kind: input, shape index: {}]   ;;  %s1460_s4 = inlined_call_operand.hbm [shape: f32[2,16,256], index: 4, kind: input, shape index: {}]   ;;  %s1461_s5 = inlined_call_operand.vmem [shape: f32[32,16], index: 5, kind: input, shape index: {}]   ;;  %s1462_s6 = inlined_call_operand.vmem [shape: f32[32,32], index: 6, kind: input, shape index: {}]   ;;  %s1463_s7 = inlined_call_operand.hbm [shape: f32[2,32,256], index: 7, kind: input, shape index: {}]   ;;  %s1464_s8 = inlined_call_operand.vmem [shape: f32[1,32], index: 8, kind: input, shape index: {}]   ;;  %s1465_s9 = inlined_call_operand.vmem [shape: f32[2,256], index: 9, kind: input, shape index: {}]   ;;  %s1466_s10 = inlined_call_operand.hbm [shape: f32[2,256], index: 10, kind: output, shape index: {0}]   ;;  %s1467_s11 = inlined_call_operand.hbm [shape: f32[2,32], index: 11, kind: output, shape index: {1}]   ;;  %s1468_s12 = inlined_call_operand.hbm [shape: f32[2,32], index: 12, kind: output, shape index: {2}]  }
   0x1   :  { %19 = vsyncpa [#allocation7], 0 }
   0x2   :  { %20 = vsyncpa [#allocation5], 0 }
   0x3   :  { %21 = vsyncpa [#allocation11], 0  ;;  %s1205_s21 = smov [#allocation6]   ;;  %s1065_s25 = scalar_lea.hbm %s1460_s4, 1024 }
   0x4   :  { %s45_s22 = sshll.u32 %s1205_s21, 4  ;;  %p1066_p0 = scmp.ne.s32.totalorder %s1460_s4, %s1065_s25  ;;  %s46_s22 = int_to_ptr.vmem [resolvable:$true] %s45_s22 }
   0x5   :  { %p1069_p1 = scmp.lt.u32.totalorder %s1065_s25, %s1460_s4 }
   0x7   :  { %p1071_p2 = pnand %p1069_p1, %p1066_p0 }
   0x9   :  { %1074 = shalt.err (!%p1071_p2)
}
   0xa   :  { %s1075_s30 = scalar_lea.vmem %s46_s22, 1024  ;;  %p1080_p4 = scmp.lt.s32.totalorder %s46_s22, %s46_s22 }
   0xb   :  { %p1076_p3 = scmp.ne.s32.totalorder %s46_s22, %s1075_s30  ;;  %p1081_p5 = scmp.lt.s32.totalorder %s1075_s30, %s1075_s30 }
   0xd   :  { %p1082_p6 = por %p1081_p5, %p1080_p4 }
   0xf   :  { %p1083_p7 = pnand %p1082_p6, %p1076_p3 }
  0x11   :  { %1086 = shalt.err (!%p1083_p7)
}
  0x12   :  { %s1206_s13 = smov 256   ;;  %s1207_s14 = smov 16  }
  0x13   :  { %51 = dma.hbm_to_vmem [thread:$0]  %s1460_s4, 1024, %s46_s22, [#allocation7], %s1206_s13, %s1206_s13, %s1207_s14  }
  0x14   :  { %s1208_s17 = smov [#allocation3]   ;;  %s1087_s21 = scalar_lea.hbm %s1457_s1, 1024 }
  0x15   :  { %s29_s18 = sshll.u32 %s1208_s17, 4  ;;  %p1088_p8 = scmp.ne.s32.totalorder %s1457_s1, %s1087_s21  ;;  %s30_s18 = int_to_ptr.vmem [resolvable:$true] %s29_s18 }
  0x16   :  { %p1091_p9 = scmp.lt.u32.totalorder %s1087_s21, %s1457_s1 }
  0x18   :  { %p1093_p10 = pnand %p1091_p9, %p1088_p8 }
  0x1a   :  { %1096 = shalt.err (!%p1093_p10)
}
  0x1b   :  { %s1097_s27 = scalar_lea.vmem %s30_s18, 1024  ;;  %p1102_p12 = scmp.lt.s32.totalorder %s30_s18, %s30_s18 }
  0x1c   :  { %p1098_p11 = scmp.ne.s32.totalorder %s30_s18, %s1097_s27  ;;  %p1103_p13 = scmp.lt.s32.totalorder %s1097_s27, %s1097_s27 }
  0x1e   :  { %p1104_p0 = por %p1103_p13, %p1102_p12 }
  0x20   :  { %p1105_p1 = pnand %p1104_p0, %p1098_p11 }
  0x22   :  { %1108 = shalt.err (!%p1105_p1)
}
  0x23   :  { %s1209_s4 = smov 128   ;;  %s1210_s22 = smov 8  }
  0x24   :  { %35 = dma.hbm_to_vmem [thread:$0]  %s1457_s1, 1024, %s30_s18, [#allocation4], %s1209_s4, %s1209_s4, %s1210_s22  }
  0x25   :  { %s1211_s30 = smov [#allocation8]   ;;  %s1109_s19 = scalar_lea.hbm %s1463_s7, 2048 }
  0x26   :  { %s61_s15 = sshll.u32 %s1211_s30, 4  ;;  %p1110_p2 = scmp.ne.s32.totalorder %s1463_s7, %s1109_s19  ;;  %s62_s15 = int_to_ptr.vmem [resolvable:$true] %s61_s15 }
  0x27   :  { %p1113_p3 = scmp.lt.u32.totalorder %s1109_s19, %s1463_s7 }
  0x29   :  { %p1115_p4 = pnand %p1113_p3, %p1110_p2 }
  0x2b   :  { %1118 = shalt.err (!%p1115_p4)
}
  0x2c   :  { %s1119_s25 = scalar_lea.vmem %s62_s15, 2048  ;;  %p1124_p6 = scmp.lt.s32.totalorder %s62_s15, %s62_s15 }
  0x2d   :  { %p1120_p5 = scmp.ne.s32.totalorder %s62_s15, %s1119_s25  ;;  %p1125_p7 = scmp.lt.s32.totalorder %s1119_s25, %s1119_s25 }
  0x2f   :  { %p1126_p8 = por %p1125_p7, %p1124_p6 }
  0x31   :  { %p1127_p9 = pnand %p1126_p8, %p1120_p5 }
  0x33   :  { %1130 = shalt.err (!%p1127_p9)
}
  0x34   :  { %67 = dma.hbm_to_vmem [thread:$0]  %s1463_s7, 2048, %s62_s15, [#allocation7], %s1206_s13, %s1206_s13, %s1207_s14  }
  0x35   :  { %1197 = dma.done.wait [#allocation4], 1024  }
  0x36   :  { %1198 = vsyncadd [#allocation4], 4294966272 }
  0x37   :  { %1199 = dma.done.wait [#allocation7], 3072  }
  0x38   :  { %1200 = vsyncadd [#allocation7], 4294964224  ;;  %v1212_v0 = vmov 0.0|0.0   ;;  %vm1213_vm0 = vmmov 0   ;;  %v1214_v1 = vmov 0.0   ;;  %v86_v2 = vld [vmem:[#allocation3] sm:$0xff] }
  0x39   :  { %961 = vmatprep.subr.bf16.mxu0 %v1212_v0  ;;  %950 = vmatprep.mubr.msk.f32.mxu0 %vm1213_vm0, %v1214_v1  ;;  %v87_v3 = vld [vmem:[#allocation3 + $0x8] sm:$0xff]  ;;  %v88_v4 = vld [vmem:[#allocation3 + $0x10] sm:$0xff]  ;;  %v89_v6 = vld [vmem:[#allocation3 + $0x18] sm:$0xff]  ;;  %vm101_vm1 = vcmask 523264   ;;  %s1215_s27 = smov 64   ;;  %vm219_vm2 = vcmask 261120  }
  0x3a   :  { %v962_v5 = vpack.c.bf16 %v87_v3, %v86_v2  ;;  %v965_v7 = vpack.c.bf16 %v89_v6, %v88_v4  ;;  %v90_v8 = vld [vmem:[#allocation3 + $0x20] sm:$0xff]  ;;  %v91_v9 = vld [vmem:[#allocation3 + $0x28] sm:$0xff]  ;;  %v92_v11 = vld [vmem:[#allocation3 + $0x30] sm:$0xff]  ;;  %vm358_vm3 = vcmask 130048   ;;  %vm208_vm4 = vcmask 254976   ;;  %s1222_s13 = smov [#allocation10]  }
  0x3b   :  { %v968_v10 = vpack.c.bf16 %v91_v9, %v90_v8  ;;  %v93_v12 = vld [vmem:[#allocation3 + $0x38] sm:$0xff]  ;;  %v85_v14 = vld [vmem:[%s1456_s0] sm:$0x3]  ;;  %s1216_s0 = smov 32   ;;  %v561_v35 = vld [vmem:[#allocation6 + $0x28] sm:$0xff]  ;;  %v1217_v55 = vmov 0  }
  0x3c   :  { %963 = vmatpush3.bf16.msra.mxu0 %v962_v5  ;;  %v971_v13 = vpack.c.bf16 %v93_v12, %v92_v11  ;;  %v901_v15 = vld [vmem:[%s1458_s2] ss:$0 sm:$0xff]  ;;  %v563_v36 = vld [vmem:[#allocation6 + $0x38] sm:$0xff]  ;;  %v562_v39 = vld [vmem:[#allocation6 + $0x30] sm:$0xff]  ;;  %1017 = vset.pattern.permute.xlu0 %v1217_v55  ;;  %vm319_vm5 = vcmask 15360   ;;  %v1218_v4 = vmov 1  }
  0x3d   :  { %964 = vmatprep.subr.bf16.mxu0 %v1212_v0  ;;  %v182_v20 = vld [vmem:[%s1459_s3] sm:$0x3]  ;;  %v985_v38 = vpack.c.bf16 %v563_v36, %v561_v35  ;;  %v326_v42 = vld [vmem:[%s1461_s5 + $0x8] sm:$0xff]  ;;  %v327_v43 = vld [vmem:[%s1461_s5 + $0x10] sm:$0xff]  ;;  %1018 = vset.pattern.permute.xlu1 %v1217_v55  ;;  %vm771_vm6 = vcmask 1040384   ;;  %vm807_vm7 = vcmask 1041408  }
  0x3e   :  { %v215_v32 = vld [vmem:[%s1462_s6] sm:$0xff]  ;;  %v328_v44 = vld [vmem:[%s1461_s5 + $0x18] sm:$0xff]  ;;  %v331_v45 = vld [vmem:[#allocation6 + $0x8] sm:$0xff]  ;;  %s872_s14 = sshll.u32 %s1222_s13, 4  ;;  %s873_s14 = int_to_ptr.vmem [resolvable:$true] %s872_s14 }
  0x3f   :  { %955 = vmatprep.mubr.msk.f32.mxu1 %vm219_vm2, %v215_v32  ;;  %v560_v37 = vld [vmem:[#allocation6 + $0x20] sm:$0xff]  ;;  %v333_v46 = vld [vmem:[#allocation6 + $0x18] sm:$0xff]  ;;  %v332_v49 = vld [vmem:[#allocation6 + $0x10] sm:$0xff]  ;;  %s1131_s26 = scalar_lea.vmem %s873_s14, 32  ;;  %p1136_p11 = scmp.lt.s32.totalorder %s873_s14, %s873_s14 }
  0x40   :  { %966 = vmatpush3.bf16.msra.mxu0 %v965_v7  ;;  %v987_v40 = vpack.c.bf16 %v562_v39, %v560_v37  ;;  %v325_v41 = vld [vmem:[%s1461_s5] sm:$0xff]  ;;  %v973_v47 = vpack.c.bf16 %v333_v46, %v331_v45  ;;  %v216_v51 = vld [vmem:[%s1462_s6 + $0x8] sm:$0xff]  ;;  %v217_v53 = vld [vmem:[%s1462_s6 + $0x10] sm:$0xff]  ;;  %p1132_p10 = scmp.ne.s32.totalorder %s873_s14, %s1131_s26  ;;  %p1137_p12 = scmp.lt.s32.totalorder %s1131_s26, %s1131_s26 }
  0x41   :  { %967 = vmatprep.subr.bf16.mxu0 %v1212_v0  ;;  %v330_v48 = vld [vmem:[#allocation6] sm:$0xff]  ;;  %v218_v54 = vld [vmem:[%s1462_s6 + $0x18] sm:$0xff]  ;;  %v466_v35 = vld [vmem:[#allocation8 + $0x30] sm:$0xff] }
  0x42   :  { %v975_v52 = vpack.c.bf16 %v332_v49, %v330_v48  ;;  %p1138_p13 = por %p1137_p12, %p1136_p11 }
  0x44   :  { %969 = vmatpush3.bf16.msra.mxu0 %v968_v10  ;;  %p1139_p0 = pnand %p1138_p13, %p1132_p10 }
  0x45   :  { %970 = vmatprep.subr.bf16.mxu0 %v1212_v0 }
  0x48   :  { %972 = vmatpush3.bf16.msra.mxu0 %v971_v13 }
  0x49   :  { %986 = vmatprep.subr.bf16.mxu0 %v985_v38  ;;  %v467_v38 = vld [vmem:[#allocation8 + $0x38] sm:$0xff] }
  0x4b   :  { %951 = vmatmul.mubr.msk.f32.vlgmr.msra.gmra.mrb[0].mxu0 %vm101_vm1, %v85_v14 }
  0x4c   :  { %644 = vmatprep.mubr.f32.mxu0 %v1214_v1  ;;  %988 = vmatpush1.bf16.msra.mxu0 %v987_v40 }
  0x4f   :  { %914 = vmatmul.mubr.msk.f32.vlgmr.msra.gmra.mrb[2].mxu0 %vm358_vm3, %v325_v41 }
  0x50   :  { %650 = vmatprep.mubr.f32.mxu0 %v1214_v1 }
  0x53   :  { %915 = vmatmul.mubr.msk.f32.gmra.mrb[4].mxu0 %vm358_vm3, %v326_v42 }
  0x54   :  { %656 = vmatprep.mubr.f32.mxu0 %v1214_v1 }
  0x57   :  { %916 = vmatmul.mubr.msk.f32.gmra.mrb[6].mxu0 %vm358_vm3, %v327_v43 }
  0x58   :  { %662 = vmatprep.mubr.f32.mxu0 %v1214_v1 }
  0x5b   :  { %917 = vmatmul.mubr.msk.f32.gmra.mrb[8].mxu0 %vm358_vm3, %v328_v44 }
 0x11e   :  { %v171_v16 = vpop.f32.mrb[0].mxu0 }
 0x11f   :  { %v172_v17 = vadd.f32 %v901_v15, %v171_v16  ;;  %v952_v18 = vpop.f32.mrb[1].mxu0 }
 0x120   :  { %v462_v18 = vld [vmem:[#allocation8 + $0x10] sm:$0xff] }
 0x121   :  { %1021 = vtanh.f32 %v172_v17  ;;  %v903_v21 = vmul.f32 -1.442695, %v172_v17 }
 0x122   :  { %v646_v3 = vpop.f32.mrb[2].mxu0 }
 0x123   :  { %1023 = vpow2.f32 %v903_v21  ;;  %v648_v6 = vpop.f32.mrb[3].mxu0 }
 0x126   :  { %v1393_v7 = vpop.f32.mrb[4].mxu0 }
 0x127   :  { %v1395_v9 = vpop.f32.mrb[5].mxu0 }
 0x12a   :  { %v1397_v12 = vpop.f32.mrb[6].mxu0 }
 0x12b   :  { %v1022_v19 = vpop.eup %1021  ;;  %v1399_v13 = vpop.f32.mrb[7].mxu0 }
 0x12c   :  { %189 = vrot.lane.b32.xlu0 %v1022_v19, %s1215_s27 }
 0x12d   :  { %v1024_v22 = vpop.eup %1023 }
 0x12e   :  { %v178_v23 = vadd.f32 1.0, %v1024_v22  ;;  %v664_v14 = vpop.f32.mrb[8].mxu0 }
 0x12f   :  { %v666_v16 = vpop.f32.mrb[9].mxu0 }
 0x130   :  { %184 = vrot.lane.b32.xlu0 %v182_v20, %s1216_s0  ;;  %1025 = vrcp.f32 %v178_v23  ;;  %v463_v20 = vld [vmem:[#allocation8 + $0x18] sm:$0xff]  ;;  %v460_v23 = vld [vmem:[#allocation8] sm:$0xff] }
 0x13a   :  { %v1026_v24 = vpop.eup %1025 }
 0x19e   :  { %v190_v25 = vpop.permute.xlu0 %189 }
 0x19f   :  { %v192_v26 = vmul.f32 %v1026_v24, %v190_v25 }
 0x1a1   :  { %194 = vrot.lane.b32.xlu1 %v192_v26, %s1216_s0 }
 0x1a2   :  { %v185_v27 = vpop.permute.xlu0 %184 }
 0x1a3   :  { %v187_v28 = vmul.f32 %v1026_v24, %v185_v27 }
 0x213   :  { %v195_v29 = vpop.permute.xlu1 %194 }
 0x214   :  { %v1343_v30 = vadd.f32 %v195_v29, %v187_v28 }
 0x216   :  { %1027 = vtanh.f32 %v1343_v30 }
 0x220   :  { %v1028_v31 = vpop.eup %1027 }
 0x221   :  { %200 = vrot.lane.b32.xlu1 %v1028_v31, %s1215_s27 }
 0x293   :  { %v201_v33 = vpop.permute.xlu1 %200 }
 0x294   :  { %v203_v34 = vmul.f32 %v1026_v24, %v201_v33  ;;  %v461_v24 = vld [vmem:[#allocation8 + $0x8] sm:$0xff] }
 0x296   :  { %205 = vrot.lane.b32.xlu0 %v203_v34, %s1216_s0 }
 0x308   :  { %v206_v50 = vpop.permute.xlu0 %205 }
 0x309   :  { %953 = vmatprep.subr.msk.mxu1 %vm219_vm2, %v206_v50  ;;  %209 = vst.msk [vmem:[#allocation10] sm:$0x3] %vm208_vm4, %v206_v50 }
 0x30a   :  { %954 = vmatpush3.xpose.msk.msra.mxu1 %vm219_vm2, %v206_v50  ;;  %v671_v50 = vld [vmem:[#allocation8 + $0x48] sm:$0xff] }
 0x30b   :  { %974 = vmatprep.subr.bf16.mxu1 %v973_v47 }
 0x30d   :  { %956 = vmatmul.mubr.msk.f32.vlgmr.msra.gmra.mrb[0].mxu1 %vm219_vm2, %v216_v51 }
 0x30e   :  { %958 = vmatprep.mubr.msk.f32.mxu1 %vm219_vm2, %v217_v53  ;;  %976 = vmatpush1.bf16.msra.mxu1 %v975_v52 }
 0x311   :  { %959 = vmatmul.mubr.msk.f32.gmra.mrb[2].mxu1 %vm219_vm2, %v218_v54 }
 0x312   :  { %435 = vmatprep.mubr.f32.mxu1 %v1214_v1 }
 0x315   :  { %909 = vmatmul.mubr.msk.f32.vlgmr.msra.gmra.mrb[4].mxu1 %vm358_vm3, %v325_v41  ;;  %v464_v41 = vld [vmem:[#allocation8 + $0x20] sm:$0xff] }
 0x316   :  { %441 = vmatprep.mubr.f32.mxu1 %v1214_v1 }
 0x319   :  { %910 = vmatmul.mubr.msk.f32.gmra.mrb[6].mxu1 %vm358_vm3, %v326_v42  ;;  %v465_v42 = vld [vmem:[#allocation8 + $0x28] sm:$0xff] }
 0x31a   :  { %447 = vmatprep.mubr.f32.mxu1 %v1214_v1 }
 0x31d   :  { %911 = vmatmul.mubr.msk.f32.gmra.mrb[8].mxu1 %vm358_vm3, %v327_v43 }
 0x31e   :  { %453 = vmatprep.mubr.f32.mxu1 %v1214_v1 }
 0x321   :  { %912 = vmatmul.mubr.msk.f32.gmra.mrb[10].mxu1 %vm358_vm3, %v328_v44  ;;  %v670_v44 = vld [vmem:[#allocation8 + $0x40] sm:$0xff] }
 0x322   :  { %552 = vmatprep.mubr.f32.mxu1 %v1214_v1 }
 0x3e0   :  { %v957_v56 = vpop.f32.mrb[0].mxu1 }
 0x3e1   :  { %321 = vst.msk [vmem:[#allocation2 + $0x8] sm:$0xff] %vm319_vm5, %v957_v56  ;;  %v300_v57 = vpop.f32.mrb[1].mxu1  ;;  %v676_v56 = vld [vmem:[#allocation8 + $0x70] sm:$0xff] }
 0x3e2   :  { %320 = vst.msk [vmem:[#allocation2] sm:$0xff] %vm319_vm5, %v300_v57 }
 0x3e4   :  { %v960_v58 = vpop.f32.mrb[2].mxu1 }
 0x3e5   :  { %323 = vst.msk [vmem:[#allocation2 + $0x18] sm:$0xff] %vm319_vm5, %v960_v58  ;;  %v310_v59 = vpop.f32.mrb[3].mxu1  ;;  %v672_v58 = vld [vmem:[#allocation8 + $0x50] sm:$0xff] }
 0x3e6   :  { %322 = vst.msk [vmem:[#allocation2 + $0x10] sm:$0xff] %vm319_vm5, %v310_v59  ;;  %v673_v59 = vld [vmem:[#allocation8 + $0x58] sm:$0xff] }
 0x3e8   :  { %v335_v60 = vld [vmem:[#allocation2 + $0x8] sm:$0xff]  ;;  %v437_v61 = vpop.f32.mrb[4].mxu1 }
 0x3e9   :  { %345 = vperm.xlu0 %1017, %v335_v60   ;;  %v334_v62 = vld [vmem:[#allocation2] sm:$0xff]  ;;  %v439_v63 = vpop.f32.mrb[5].mxu1 }
 0x3ea   :  { %340 = vperm.xlu1 %1018, %v334_v62  }
 0x3ec   :  { %v337_v0 = vld [vmem:[#allocation2 + $0x18] sm:$0xff]  ;;  %v443_v2 = vpop.f32.mrb[6].mxu1 }
 0x3ed   :  { %1019 = vset.pattern.permute.xlu0 %v1218_v4  ;;  %v445_v5 = vpop.f32.mrb[7].mxu1  ;;  %v336_v10 = vld [vmem:[#allocation2 + $0x10] sm:$0xff] }
 0x3ee   :  { %565 = vperm.xlu0 %1019, %v334_v62   ;;  %355 = vperm.xlu1 %1018, %v337_v0   ;;  %v677_v62 = vld [vmem:[#allocation8 + $0x78] sm:$0xff] }
 0x3f0   :  { %v449_v8 = vpop.f32.mrb[8].mxu1 }
 0x3f1   :  { %v451_v11 = vpop.f32.mrb[9].mxu1 }
 0x3f2   :  { %577 = vperm.xlu0 %1019, %v337_v0   ;;  %350 = vperm.xlu1 %1018, %v336_v10  }
 0x3f4   :  { %v455_v15 = vpop.f32.mrb[10].mxu1 }
 0x3f5   :  { %v457_v17 = vpop.f32.mrb[11].mxu1 }
 0x3f6   :  { %1020 = vset.pattern.permute.xlu1 %v1218_v4 }
 0x3f7   :  { %569 = vperm.xlu1 %1020, %v335_v60  }
 0x3fb   :  { %573 = vperm.xlu1 %1020, %v336_v10  }
 0x468   :  { %v346_v19 = vpop.permute.xlu0 %345 }
 0x469   :  { %v444_v21 = vadd.f32 %v443_v2, %v346_v19  ;;  %v446_v22 = vadd.f32 %v445_v5, %v346_v19  ;;  %v341_v25 = vpop.permute.xlu1 %340 }
 0x46a   :  { %v438_v26 = vadd.f32 %v437_v61, %v341_v25  ;;  %v440_v27 = vadd.f32 %v439_v63, %v341_v25 }
 0x46b   :  { %v470_v28 = vadd.f32 %v462_v18, %v444_v21  ;;  %v471_v29 = vadd.f32 %v463_v20, %v446_v22 }
 0x46c   :  { %v468_v31 = vadd.f32 %v460_v23, %v438_v26  ;;  %v469_v32 = vadd.f32 %v461_v24, %v440_v27 }
 0x46d   :  { %1029 = vtanh.f32 %v470_v28  ;;  %v566_v33 = vpop.permute.xlu0 %565  ;;  %v356_v34 = vpop.permute.xlu1 %355  ;;  %v329_v28 = vld [vmem:[%s1464_s8] sm:$0x1] }
 0x46e   :  { %1031 = vtanh.f32 %v471_v29  ;;  %v456_v36 = vadd.f32 %v455_v15, %v356_v34  ;;  %v458_v37 = vadd.f32 %v457_v17, %v356_v34  ;;  %v647_v39 = vadd.f32 %v646_v3, %v566_v33 }
 0x46f   :  { %1033 = vtanh.f32 %v468_v31  ;;  %v649_v45 = vadd.f32 %v648_v6, %v566_v33 }
 0x470   :  { %1035 = vtanh.f32 %v469_v32  ;;  %v474_v40 = vadd.f32 %v466_v35, %v456_v36  ;;  %v475_v46 = vadd.f32 %v467_v38, %v458_v37  ;;  %v678_v53 = vadd.f32 %v670_v44, %v647_v39 }
 0x471   :  { %v351_v43 = vpop.permute.xlu1 %350  ;;  %v578_v47 = vpop.permute.xlu0 %577  ;;  %v679_v55 = vadd.f32 %v671_v50, %v649_v45 }
 0x472   :  { %v450_v48 = vadd.f32 %v449_v8, %v351_v43  ;;  %v452_v49 = vadd.f32 %v451_v11, %v351_v43  ;;  %1037 = vtanh.f32 %v474_v40  ;;  %v665_v54 = vadd.f32 %v664_v14, %v578_v47  ;;  %v674_v11 = vld [vmem:[#allocation8 + $0x60] sm:$0xff]  ;;  %v675_v14 = vld [vmem:[#allocation8 + $0x68] sm:$0xff] }
 0x473   :  { %1039 = vtanh.f32 %v475_v46  ;;  %v667_v57 = vadd.f32 %v666_v16, %v578_v47  ;;  %v1219_v47 = vmov 1983009808  }
 0x474   :  { %v472_v51 = vadd.f32 %v464_v41, %v450_v48  ;;  %v473_v52 = vadd.f32 %v465_v42, %v452_v49  ;;  %v684_v4 = vadd.f32 %v676_v56, %v665_v54  ;;  %v798_v48 = vunpack.c.l.s4 %v1219_v47 }
 0x475   :  { %v685_v10 = vadd.f32 %v677_v62, %v667_v57  ;;  %v800_v49 = vlaneseq }
 0x476   :  { %v570_v60 = vpop.permute.xlu1 %569  ;;  %1041 = vtanh.f32 %v472_v51  ;;  %v794_v51 = vld [vmem:[%s1465_s9] sm:$0xf]  ;;  %s1221_s9 = smov 96  }
 0x477   :  { %v1030_v61 = vpop.eup %1029  ;;  %v653_v63 = vadd.f32 %v1393_v7, %v570_v60  ;;  %v655_v0 = vadd.f32 %v1395_v9, %v570_v60  ;;  %1043 = vtanh.f32 %v473_v52  ;;  %v801_v50 = vshrl.u32 %v800_v49, 7 }
 0x478   :  { %v1032_v2 = vpop.eup %1031  ;;  %1045 = vtanh.f32 %v678_v53  ;;  %v1220_v60 = vmov 269488144  }
 0x479   :  { %v1034_v3 = vpop.eup %1033  ;;  %v680_v5 = vadd.f32 %v672_v58, %v653_v63  ;;  %v681_v6 = vadd.f32 %v673_v59, %v655_v0  ;;  %1047 = vtanh.f32 %v679_v55 }
 0x47a   :  { %v1036_v8 = vpop.eup %1035  ;;  %v574_v15 = vpop.permute.xlu1 %573  ;;  %v979_v16 = vpack.c.bf16 %v1030_v61, %v1034_v3  ;;  %v815_v61 = vunpack.c.l.s4 %v1220_v60 }
 0x47b   :  { %1049 = vtanh.f32 %v680_v5  ;;  %v659_v17 = vadd.f32 %v1397_v12, %v574_v15  ;;  %v661_v7 = vadd.f32 %v1399_v13, %v574_v15  ;;  %v977_v9 = vpack.c.bf16 %v1032_v2, %v1036_v8 }
 0x47c   :  { %1051 = vtanh.f32 %v681_v6  ;;  %v1038_v20 = vpop.eup %1037  ;;  %v816_v62 = vunpack.c.0.s8 %v815_v61 }
 0x47d   :  { %1053 = vtanh.f32 %v684_v4  ;;  %v682_v18 = vadd.f32 %v674_v11, %v659_v17  ;;  %v683_v19 = vadd.f32 %v675_v14, %v661_v7  ;;  %978 = vmatprep.subr.bf16.mxu1 %v977_v9  ;;  %v1040_v21 = vpop.eup %1039 }
 0x47e   :  { %1055 = vtanh.f32 %v685_v10  ;;  %980 = vmatpush1.bf16.msra.mxu1 %v979_v16  ;;  %v819_v63 = vsub.s32 %v816_v62, %v801_v50 }
 0x47f   :  { %1057 = vtanh.f32 %v682_v18 }
 0x480   :  { %1059 = vtanh.f32 %v683_v19  ;;  %v1042_v22 = vpop.eup %1041 }
 0x481   :  { %v1044_v23 = vpop.eup %1043  ;;  %v983_v24 = vpack.c.bf16 %v1038_v20, %v1042_v22 }
 0x482   :  { %v1046_v25 = vpop.eup %1045  ;;  %v981_v26 = vpack.c.bf16 %v1040_v21, %v1044_v23 }
 0x483   :  { %v1048_v12 = vpop.eup %1047 }
 0x484   :  { %982 = vmatprep.subr.bf16.mxu1 %v981_v26 }
 0x485   :  { %v1050_v27 = vpop.eup %1049  ;;  %984 = vmatpush1.bf16.msra.mxu1 %v983_v24 }
 0x486   :  { %v1052_v13 = vpop.eup %1051  ;;  %v991_v29 = vpack.c.bf16 %v1050_v27, %v1046_v25 }
 0x487   :  { %v1054_v31 = vpop.eup %1053  ;;  %v989_v32 = vpack.c.bf16 %v1052_v13, %v1048_v12 }
 0x488   :  { %v1056_v33 = vpop.eup %1055  ;;  %913 = vmatmul.mubr.msk.f32.vlgmr.msra.gmra.mrb[12].mxu1 %vm219_vm2, %v329_v28 }
 0x489   :  { %v1058_v34 = vpop.eup %1057  ;;  %990 = vmatprep.subr.bf16.mxu1 %v989_v32  ;;  %758 = vmatprep.mubr.f32.mxu1 %v1214_v1  ;;  %v799_v1 = vunpack.c.0.s8 %v798_v48 }
 0x48a   :  { %v1060_v35 = vpop.eup %1059  ;;  %992 = vmatpush1.bf16.msra.mxu1 %v991_v29  ;;  %v995_v36 = vpack.c.bf16 %v1054_v31, %v1058_v34 }
 0x48b   :  { %v993_v37 = vpack.c.bf16 %v1056_v33, %v1060_v35  ;;  %v802_v52 = vsub.s32 %v799_v1, %v801_v50 }
 0x48d   :  { %994 = vmatprep.subr.bf16.mxu1 %v993_v37 }
 0x48e   :  { %996 = vmatpush1.bf16.msra.mxu1 %v995_v36 }
 0x491   :  { %918 = vmatmul.mubr.msk.f32.vlgmr.msra.gmra.mrb[14].mxu1 %vm219_vm2, %v329_v28 }
 0x55b   :  { %v554_v38 = vpop.f32.mrb[12].mxu1 }
 0x55c   :  { %v556_v39 = vpop.f32.mrb[13].mxu1 }
 0x564   :  { %v760_v40 = vpop.f32.mrb[14].mxu1 }
 0x565   :  { %v767_v41 = vrot.slane %v760_v40, 7  ;;  %v762_v42 = vpop.f32.mrb[15].mxu1 }
 0x566   :  { %v768_v43 = vrot.slane %v762_v42, 7 }
 0x567   :  { %v772_v44 = vsel %vm771_vm6, %v554_v38, %v767_v41 }
 0x568   :  { %v773_v45 = vsel %vm771_vm6, %v556_v39, %v768_v43 }
 0x569   :  { %v776_v46 = vcombine.low %v772_v44, %v773_v45 }
 0x56b   :  { %919 = vst.sshfl [vmem:[#allocation9] sm:$0x33 pattern:$0x76325410] %v776_v46 }
 0x572   :  { %v793_v53 = vld [vmem:[#allocation9] sm:$0xf] }
 0x573   :  { %v795_v54 = vadd.f32 %v794_v51, %v793_v53 }
 0x575   :  { %v803_v55 = vrot.slane %v795_v54, %v802_v52 }
 0x577   :  { %v804_v56 = vcombine.high %v803_v55, %v803_v55  ;;  %v808_v57 = vsel %vm807_vm7, %v803_v55, -inf }
 0x579   :  { %v809_v58 = vsel %vm807_vm7, %v804_v56, -inf }
 0x57a   :  { %v810_v59 = vmax.f32 %v808_v57, %v809_v58 }
 0x57c   :  { %811 = vmax.xlane.f32.xlu1 %v810_v59 }
 0x609   :  { %v812_v0 = vpop.xlane.xlu1 %811 }
 0x60a   :  { %v820_v2 = vrot.slane %v812_v0, %v819_v63 }
 0x60c   :  { %v822_v3 = vsub.f32 %v795_v54, %v820_v2 }
 0x60e   :  { %v823_v4 = vmul.f32 1.442695, %v822_v3 }
 0x610   :  { %1061 = vpow2.f32 %v823_v4 }
 0x61a   :  { %v1062_v5 = vpop.eup %1061 }
 0x61b   :  { %v832_v6 = vrot.slane %v1062_v5, %v802_v52 }
 0x61d   :  { %v833_v8 = vcombine.high %v832_v6, %v832_v6  ;;  %v836_v10 = vsel %vm807_vm7, %v832_v6, 0.0 }
 0x61f   :  { %v837_v11 = vsel %vm807_vm7, %v833_v8, 0.0 }
 0x620   :  { %v838_v14 = vadd.f32 %v837_v11, %v836_v10 }
 0x622   :  { %839 = vadd.xlane.f32.xlu0 %v838_v14 }
 0x638   :  { %211 = vrot.lane.b32.xlu0 %v1343_v30, %s1221_s9 }
 0x639   :  { %1142 = shalt.err (!%p1139_p0)
}
 0x63a   :  { %s1143_s22 = scalar_lea.hbm %s1467_s11, 32 }
 0x63b   :  { %p1144_p1 = scmp.ne.s32.totalorder %s1467_s11, %s1143_s22  ;;  %p1147_p2 = scmp.lt.u32.totalorder %s1143_s22, %s1467_s11 }
 0x63d   :  { %p1149_p3 = pnand %p1147_p2, %p1144_p1 }
 0x63f   :  { %1152 = shalt.err (!%p1149_p3)
}
 0x640   :  { %875 = dma.vmem_to_hbm [thread:$0]  %s873_s14, 32, %s1467_s11, [#allocation11]  }
 0x641   :  { %s1223_s15 = smov [#allocation12]  }
 0x642   :  { %s882_s16 = sshll.u32 %s1223_s15, 4  ;;  %s883_s16 = int_to_ptr.vmem [resolvable:$true] %s882_s16 }
 0x643   :  { %s1153_s17 = scalar_lea.vmem %s883_s16, 32  ;;  %p1158_p5 = scmp.lt.s32.totalorder %s883_s16, %s883_s16 }
 0x644   :  { %p1154_p4 = scmp.ne.s32.totalorder %s883_s16, %s1153_s17  ;;  %p1159_p6 = scmp.lt.s32.totalorder %s1153_s17, %s1153_s17 }
 0x646   :  { %p1160_p7 = por %p1159_p6, %p1158_p5 }
 0x648   :  { %p1161_p8 = pnand %p1160_p7, %p1154_p4 }
 0x6af   :  { %v840_v30 = vpop.xlane.xlu0 %839 }
 0x6b0   :  { %1063 = vrcp.f32 %v840_v30 }
 0x6b3   :  { %v212_v15 = vpop.permute.xlu0 %211 }
 0x6b4   :  { %214 = vst.msk [vmem:[#allocation12] sm:$0x3] %vm208_vm4, %v212_v15 }
 0x6b5   :  { %1164 = shalt.err (!%p1161_p8)
}
 0x6b6   :  { %s1165_s21 = scalar_lea.hbm %s1468_s12, 32 }
 0x6b7   :  { %p1166_p9 = scmp.ne.s32.totalorder %s1468_s12, %s1165_s21  ;;  %p1169_p10 = scmp.lt.u32.totalorder %s1165_s21, %s1468_s12 }
 0x6b9   :  { %p1171_p11 = pnand %p1169_p10, %p1166_p9 }
 0x6bb   :  { %1174 = shalt.err (!%p1171_p11)
}
 0x6bc   :  { %885 = dma.vmem_to_hbm [thread:$0]  %s883_s16, 32, %s1468_s12, [#allocation11]   ;;  %v1064_v16 = vpop.eup %1063 }
 0x6bd   :  { %v842_v17 = vmul.f32 %v1064_v16, %v840_v30  ;;  %s1224_s6 = smov [#allocation9]  }
 0x6be   :  { %s862_s18 = sshll.u32 %s1224_s6, 4  ;;  %s863_s18 = int_to_ptr.vmem [resolvable:$true] %s862_s18 }
 0x6bf   :  { %v843_v7 = vsub.f32 2.0, %v842_v17  ;;  %s1175_s8 = scalar_lea.vmem %s863_s18, 64  ;;  %p1180_p13 = scmp.lt.s32.totalorder %s863_s18, %s863_s18 }
 0x6c0   :  { %p1176_p12 = scmp.ne.s32.totalorder %s863_s18, %s1175_s8  ;;  %p1181_p0 = scmp.lt.s32.totalorder %s1175_s8, %s1175_s8 }
 0x6c1   :  { %v844_v9 = vmul.f32 %v1064_v16, %v843_v7 }
 0x6c2   :  { %p1182_p1 = por %p1181_p0, %p1180_p13 }
 0x6c3   :  { %v852_v18 = vrot.slane %v844_v9, %v819_v63 }
 0x6c4   :  { %p1183_p2 = pnand %p1182_p1, %p1176_p12 }
 0x6c5   :  { %v854_v19 = vmul.f32 %v1062_v5, %v852_v18 }
 0x6c7   :  { %855 = vst [vmem:[#allocation9] sm:$0xf] %v854_v19 }
 0x6c8   :  { %1186 = shalt.err (!%p1183_p2)
}
 0x6c9   :  { %s1187_s12 = scalar_lea.hbm %s1466_s10, 64 }
 0x6ca   :  { %p1188_p3 = scmp.ne.s32.totalorder %s1466_s10, %s1187_s12  ;;  %p1191_p4 = scmp.lt.u32.totalorder %s1187_s12, %s1466_s10 }
 0x6cc   :  { %p1193_p5 = pnand %p1191_p4, %p1188_p3 }
 0x6ce   :  { %1196 = shalt.err (!%p1193_p5)
}
 0x6cf   :  { %865 = dma.vmem_to_hbm [thread:$0]  %s863_s18, 64, %s1466_s10, [#allocation5]  }
 0x6d0   :  { %1201 = dma.done.wait [#allocation5], 64  }
 0x6d1   :  { %1202 = vsyncadd [#allocation5], 4294967232 }
 0x6d2   :  { %1203 = dma.done.wait [#allocation11], 64  }
 0x6d3   :  { %1204 = vsyncadd [#allocation11], 4294967232 }
 0x6d4   :  { %895 = vsyncpa [#allocation4], 1 }
 0x6d5   :  { %896 = vsyncpa [#allocation7], 1 }
 0x6d6   :  { %897 = vsyncpa [#allocation5], 1 }
 0x6d7   :  { %898 = vsyncpa [#allocation11], 1 }

</bundles_post_ra>
